<compile_context>
chip_gen: v6e
topology: v6e:2x2x1
jax: 0.10.0
libtpu: 0.0.40
codegen_flags: <defaults>
</compile_context>

<pallas_src>
import functools

import jax
import jax.numpy as jnp
from jax import lax
from jax.experimental import pallas as pl
from jax.experimental.pallas import tpu as pltpu


def _round_up(a: int, b: int) -> int:
    return -(-a // b) * b


def _linreg_kernel(x_ref, w_ref, b_ref, o_ref, *, nonneg: bool):
    """One (M, N) tile of  o = x @ (|W|^T if nonneg else W^T) + b.

    x_ref : (TM, K_pad)   streamed along the M grid axis
    w_ref : (TN, K_pad)   streamed along the N grid axis; contracted on its
                          last dim so no wrapper-side transpose is needed
    b_ref : (1, TN)       streamed along the N grid axis, broadcast over rows
    o_ref : (TM, TN)      lane-dense output (TN % 128 == 0)
    """
    w = w_ref[...]
    if nonneg:
        w = jnp.abs(w)  # VPU op on the current tile, hidden under MXU/DMA
    acc = lax.dot_general(
        x_ref[...], w,
        dimension_numbers=(((1,), (1,)), ((), ())),   # contract K with K
        preferred_element_type=jnp.float32)
    o_ref[...] = (acc + b_ref[...].astype(jnp.float32)).astype(o_ref.dtype)


def linear_regression_forward(x, weight, bias=None, *, nonneg: bool = False,
                              use_bf16: bool = False,
                              max_block_m: int = 512,
                              max_block_n: int = 2048):
    """Pallas implementation of LinearRegressionTorch.forward.

    Args:
      x:      (num_feature, dim_in) float32
      weight: (dim_out, dim_in) float32  (PyTorch nn.Linear layout, NOT transposed)
      bias:   (dim_out,) float32 or None (use_bias=False)
      nonneg: matches the module's `self.nonneg` flag (default False).
      use_bf16: cast x/W to bf16 (f32 accumulation) — only if tolerance allows.
    Returns:
      (num_feature, dim_out) array with x.dtype.
    """
    m, dim_in = x.shape
    dim_out, k_w = weight.shape
    assert k_w == dim_in, "weight must be (dim_out, dim_in)"
    out_dtype = x.dtype

    # Lane-dense padding (last dims -> multiples of 128).  Zero padding keeps
    # the contraction exact; padded output columns are sliced away below.
    k_pad = _round_up(dim_in, 128)
    n_pad = _round_up(dim_out, 128)

    # --- Tile sizing against a conservative VMEM budget (f32 sizes). ---------
    budget = 20 * 1024 * 1024

    # N tile: cap lanes per block, shrink until the double-buffered weight tile
    # fits within half the budget (handles very large dim_out / num_spot).
    tn = min(n_pad, _round_up(max_block_n, 128))
    while tn > 128 and 2 * tn * k_pad * 4 > budget // 2:
        tn = max(128, (tn // 2) // 128 * 128)
    n_pad = _round_up(n_pad, tn)

    # M tile: fill the remaining budget with double-buffered x/out rows.
    resident = 2 * (tn * k_pad + tn) * 4          # weight + bias tiles (2 bufs)
    per_row = 2 * (k_pad + tn) * 4                # x + out row (2 bufs)
    tm_cap = max(8, ((budget - resident) // per_row) // 8 * 8)
    tm = int(min(_round_up(m, 8), max_block_m, tm_cap))
    m_pad = _round_up(m, tm)

    compute_dtype = jnp.bfloat16 if use_bf16 else jnp.float32
    x_p = jnp.pad(x.astype(compute_dtype),
                  ((0, m_pad - m), (0, k_pad - dim_in)))
    w_p = jnp.pad(weight.astype(compute_dtype),
                  ((0, n_pad - dim_out), (0, k_pad - dim_in)))
    if bias is None:
        b_p = jnp.zeros((1, n_pad), jnp.float32)
    else:
        b_p = jnp.pad(bias.astype(jnp.float32),
                      (0, n_pad - dim_out)).reshape(1, n_pad)

    vmem_need = resident + tm * per_row
    vmem_limit = int(min(max(vmem_need + (8 << 20), 32 << 20), 56 << 20))

    kernel = functools.partial(_linreg_kernel, nonneg=nonneg)
    out_padded = pl.pallas_call(
        kernel,
        out_shape=jax.ShapeDtypeStruct((m_pad, n_pad), out_dtype),
        grid=(m_pad // tm, n_pad // tn),
        in_specs=[
            pl.BlockSpec((tm, k_pad), lambda i, j: (i, 0)),   # x tile (M axis)
            pl.BlockSpec((tn, k_pad), lambda i, j: (j, 0)),   # weight tile (N)
            pl.BlockSpec((1, tn), lambda i, j: (0, j)),       # bias tile (N)
        ],
        out_specs=pl.BlockSpec((tm, tn), lambda i, j: (i, j)),
        compiler_params=pltpu.CompilerParams(
            dimension_semantics=("parallel", "parallel"),
            vmem_limit_bytes=vmem_limit),
        cost_estimate=pl.CostEstimate(
            flops=2 * m_pad * k_pad * n_pad,
            transcendentals=0,
            bytes_accessed=4 * (m_pad * k_pad + n_pad * k_pad + m_pad * n_pad)),
    )(x_p, w_p, b_p)

    return out_padded[:m, :dim_out]


if __name__ == "__main__":
    # Shapes implied by the module / _deconv_torch usage:
    #   x : (num_feature, dim_in)   bulk signature matrix (feature x group)
    #   forward(x) -> (num_feature, dim_out)  (feature x spot)
    num_feature, dim_in, dim_out = 16, 4, 32

    key = jax.random.PRNGKey(0)
    kx, kw, kb = jax.random.split(key, 3)

    x = jax.random.normal(kx, (num_feature, dim_in), dtype=jnp.float32)
    bound = 1.0 / (dim_in ** 0.5)
    weight = jax.random.uniform(
        kw, (dim_out, dim_in), minval=-bound, maxval=bound, dtype=jnp.float32)
    bias = jax.random.uniform(
        kb, (dim_out,), minval=-bound, maxval=bound, dtype=jnp.float32)

    # Default (nonneg=False) path — mirrors torch's self.lr(x).
    out = jax.block_until_ready(linear_regression_forward(x, weight, bias))
    ref = x @ weight.T + bias
    assert out.shape == (num_feature, dim_out)
    assert jnp.allclose(out, ref, atol=1e-5, rtol=1e-5), "mismatch vs reference"

    # nonneg branch.
    out_nn = jax.block_until_ready(
        linear_regression_forward(x, weight, bias, nonneg=True))
    ref_nn = x @ jnp.abs(weight.T) + bias
    assert jnp.allclose(out_nn, ref_nn, atol=1e-5, rtol=1e-5), "nonneg mismatch"

    # No-bias path (use_bias=False in the module).
    out_nb = jax.block_until_ready(linear_regression_forward(x, weight, None))
    assert jnp.allclose(out_nb, x @ weight.T, atol=1e-5, rtol=1e-5), "no-bias mismatch"

    # Optional bf16-operand path (f32 accumulation); looser tolerance.
    out_bf = jax.block_until_ready(
        linear_regression_forward(x, weight, bias, use_bf16=True))
    assert jnp.allclose(out_bf, ref, atol=3e-2, rtol=3e-2), "bf16 mismatch"

    print("KERNEL_OK")
</pallas_src>

<mosaic_0001>
module attributes {stable_mosaic.version = 11 : i64} {
  func.func @_linreg_kernel(%arg0: i32, %arg1: i32, %arg2: memref<16x128xf32, #tpu.memory_space<vmem>>, %arg3: memref<128x128xf32, #tpu.memory_space<vmem>>, %arg4: memref<1x128xf32, #tpu.memory_space<vmem>>, %arg5: memref<16x128xf32, #tpu.memory_space<vmem>>) attributes {dimension_semantics = [#tpu.dimension_semantics<parallel>, #tpu.dimension_semantics<parallel>], iteration_bounds = array<i64: 1, 1>, scalar_prefetch = 0 : i64, scratch_operands = 0 : i64, tpu.core_type = #tpu.core_type<tc>, window_params = [{transform_indices = @transform_0, window_bounds = array<i64: 16, 128>}, {transform_indices = @transform_1, window_bounds = array<i64: 128, 128>}, {transform_indices = @transform_2, window_bounds = array<i64: 1, 128>}, {transform_indices = @transform_3, window_bounds = array<i64: 16, 128>}]} {
    %c0 = arith.constant 0 : index
    %c0_0 = arith.constant 0 : index
    %0 = vector.load %arg3[%c0, %c0_0] : memref<128x128xf32, #tpu.memory_space<vmem>>, vector<128x128xf32>
    %c0_1 = arith.constant 0 : index
    %c0_2 = arith.constant 0 : index
    %1 = vector.load %arg2[%c0_1, %c0_2] : memref<16x128xf32, #tpu.memory_space<vmem>>, vector<16x128xf32>
    %cst = arith.constant dense<0.000000e+00> : vector<16x128xf32>
    %2 = tpu.matmul %1, %0, %cst {dimension_numbers = #tpu.dot_dimension_numbers<[1], [1], [0], [0], [0, 0, 1, 0], [], []>} : vector<16x128xf32>, vector<128x128xf32>, vector<16x128xf32> -> vector<16x128xf32>
    %c0_3 = arith.constant 0 : index
    %c0_4 = arith.constant 0 : index
    %3 = vector.load %arg4[%c0_3, %c0_4] : memref<1x128xf32, #tpu.memory_space<vmem>>, vector<1x128xf32>
    %4 = vector.broadcast %3 : vector<1x128xf32> to vector<16x128xf32>
    %5 = arith.addf %2, %4 : vector<16x128xf32>
    %c0_5 = arith.constant 0 : index
    %c0_6 = arith.constant 0 : index
    %6 = vector.load %arg5[%c0_5, %c0_6] : memref<16x128xf32, #tpu.memory_space<vmem>>, vector<16x128xf32>
    tpu.vector_store %arg5[%c0_5, %c0_6], %5 {strides = array<i32>} : memref<16x128xf32, #tpu.memory_space<vmem>>, vector<16x128xf32>,
    return
  }
  func.func @transform_0(%arg0: i32, %arg1: i32) -> (i32, i32) {
    %c0_i32 = arith.constant 0 : i32
    %c0_i32_0 = arith.constant 0 : i32
    return %arg0, %c0_i32 : i32, i32
  }
  func.func @transform_1(%arg0: i32, %arg1: i32) -> (i32, i32) {
    %c0_i32 = arith.constant 0 : i32
    %c0_i32_0 = arith.constant 0 : i32
    return %arg1, %c0_i32 : i32, i32
  }
  func.func @transform_2(%arg0: i32, %arg1: i32) -> (i32, i32) {
    %c0_i32 = arith.constant 0 : i32
    %c0_i32_0 = arith.constant 0 : i32
    return %c0_i32, %arg1 : i32, i32
  }
  func.func @transform_3(%arg0: i32, %arg1: i32) -> (i32, i32) {
    %c0_i32 = arith.constant 0 : i32
    return %arg0, %arg1 : i32, i32
  }
}

</mosaic_0001>

<bundles_post_ra>
// kernel: tpu_custom_call.1
= control target key start
LH: loop header
LB: loop body
LE: loop exit
PB: predicated region body
PF: predicated region fallthrough
CT: control target
= control target key end

     0   :  { %8 = vsyncpa [#allocation3], 0  ;;  %s334_s0 = inlined_call_operand.hbm [shape: f32[16,128], index: 0, kind: input, shape index: {}]   ;;  %s335_s1 = inlined_call_operand.hbm [shape: f32[128,128], index: 1, kind: input, shape index: {}]   ;;  %s336_s2 = inlined_call_operand.vmem [shape: f32[1,128], index: 2, kind: input, shape index: {}]   ;;  %s337_s3 = inlined_call_operand.hbm [shape: f32[16,128], index: 3, kind: output, shape index: {}]  }
   0x1   :  { %9 = vsyncpa [#allocation6], 0 }
   0x2   :  { %10 = vsyncpa [#allocation4], 0  ;;  %s288_s12 = smov [#allocation2]  }
   0x3   :  { %s16_s13 = sshll.u32 %s288_s12, 4  ;;  %s17_s13 = int_to_ptr.vmem [resolvable:$true] %s16_s13 }
   0x4   :  { %s230_s14 = scalar_lea.vmem %s17_s13, 256  ;;  %p235_p1 = scmp.lt.s32.totalorder %s17_s13, %s17_s13 }
   0x5   :  { %p231_p0 = scmp.ne.s32.totalorder %s17_s13, %s230_s14  ;;  %p236_p2 = scmp.lt.s32.totalorder %s230_s14, %s230_s14 }
   0x7   :  { %p237_p3 = por %p236_p2, %p235_p1 }
   0x9   :  { %p238_p4 = pnand %p237_p3, %p231_p0 }
   0xb   :  { %241 = shalt.err (!%p238_p4)
}
   0xc   :  { %s289_s15 = smov 128   ;;  %s290_s16 = smov 8  }
   0xd   :  { %22 = dma.hbm_to_vmem [thread:$0]  %s334_s0, 256, %s17_s13, [#allocation3], %s289_s15, %s289_s15, %s290_s16  }
   0xe   :  { %s291_s19 = smov [#allocation5]  }
   0xf   :  { %s28_s20 = sshll.u32 %s291_s19, 4  ;;  %s29_s20 = int_to_ptr.vmem [resolvable:$true] %s28_s20 }
  0x10   :  { %s250_s21 = scalar_lea.vmem %s29_s20, 2048  ;;  %p255_p6 = scmp.lt.s32.totalorder %s29_s20, %s29_s20 }
  0x11   :  { %p251_p5 = scmp.ne.s32.totalorder %s29_s20, %s250_s21  ;;  %p256_p7 = scmp.lt.s32.totalorder %s250_s21, %s250_s21 }
  0x13   :  { %p257_p8 = por %p256_p7, %p255_p6 }
  0x15   :  { %p258_p9 = pnand %p257_p8, %p251_p5 }
  0x17   :  { %261 = shalt.err (!%p258_p9)
}
  0x18   :  { %34 = dma.hbm_to_vmem [thread:$0]  %s335_s1, 2048, %s29_s20, [#allocation6], %s289_s15, %s289_s15, %s290_s16  }
  0x19   :  { %282 = dma.done.wait [#allocation3], 256  }
  0x1a   :  { %283 = vsyncadd [#allocation3], 4294967040 }
  0x1b   :  { %284 = dma.done.wait [#allocation6], 2048  }
  0x1c   :  { %285 = vsyncadd [#allocation6], 4294965248  ;;  %v58_v0 = vld [vmem:[#allocation5 + $0x78] sm:$0xff]  ;;  %v57_v1 = vld [vmem:[#allocation5 + $0x70] sm:$0xff]  ;;  %s292_s24 = smov [#allocation7]  }
  0x1d   :  { %182 = vmatprep.subr.mxu0 %v58_v0  ;;  %v56_v2 = vld [vmem:[#allocation5 + $0x68] sm:$0xff]  ;;  %v59_v3 = vld [vmem:[#allocation2] sm:$0xff]  ;;  %v55_v4 = vld [vmem:[#allocation5 + $0x60] sm:$0xff]  ;;  %s150_s25 = sshll.u32 %s292_s24, 4  ;;  %s151_s25 = int_to_ptr.vmem [resolvable:$true] %s150_s25 }
  0x1e   :  { %183 = vmatpush3.xpose.msra.mxu0 %v58_v0  ;;  %214 = vmatprep.mubr.f32.mxu0 %v59_v3  ;;  %v54_v5 = vld [vmem:[#allocation5 + $0x58] sm:$0xff]  ;;  %v53_v6 = vld [vmem:[#allocation5 + $0x50] sm:$0xff]  ;;  %v52_v7 = vld [vmem:[#allocation5 + $0x48] sm:$0xff]  ;;  %s262_s26 = scalar_lea.vmem %s151_s25, 256  ;;  %p267_p11 = scmp.lt.s32.totalorder %s151_s25, %s151_s25 }
  0x1f   :  { %184 = vmatprep.subr.mxu0 %v57_v1  ;;  %v51_v8 = vld [vmem:[#allocation5 + $0x40] sm:$0xff]  ;;  %v50_v9 = vld [vmem:[#allocation5 + $0x38] sm:$0xff]  ;;  %v49_v10 = vld [vmem:[#allocation5 + $0x30] sm:$0xff]  ;;  %p263_p10 = scmp.ne.s32.totalorder %s151_s25, %s262_s26  ;;  %p268_p12 = scmp.lt.s32.totalorder %s262_s26, %s262_s26 }
  0x20   :  { %v48_v11 = vld [vmem:[#allocation5 + $0x28] sm:$0xff]  ;;  %v47_v12 = vld [vmem:[#allocation5 + $0x20] sm:$0xff]  ;;  %v46_v13 = vld [vmem:[#allocation5 + $0x18] sm:$0xff] }
  0x21   :  { %v45_v14 = vld [vmem:[#allocation5 + $0x10] sm:$0xff]  ;;  %v44_v15 = vld [vmem:[#allocation5 + $0x8] sm:$0xff]  ;;  %v43_v16 = vld [vmem:[#allocation5] sm:$0xff]  ;;  %p269_p13 = por %p268_p12, %p267_p11 }
  0x22   :  { %185 = vmatpush3.xpose.msra.mxu0 %v57_v1  ;;  %v60_v17 = vld [vmem:[#allocation2 + $0x8] sm:$0xff]  ;;  %v163_v18 = vld [vmem:[%s336_s2] ss:$0 sm:$0xff] }
  0x23   :  { %186 = vmatprep.subr.mxu0 %v56_v2  ;;  %p270_p0 = pnand %p269_p13, %p263_p10 }
  0x26   :  { %187 = vmatpush3.xpose.msra.mxu0 %v56_v2 }
  0x27   :  { %188 = vmatprep.subr.mxu0 %v55_v4 }
  0x2a   :  { %189 = vmatpush3.xpose.msra.mxu0 %v55_v4 }
  0x2b   :  { %190 = vmatprep.subr.mxu0 %v54_v5 }
  0x2e   :  { %191 = vmatpush3.xpose.msra.mxu0 %v54_v5 }
  0x2f   :  { %192 = vmatprep.subr.mxu0 %v53_v6 }
  0x32   :  { %193 = vmatpush3.xpose.msra.mxu0 %v53_v6 }
  0x33   :  { %194 = vmatprep.subr.mxu0 %v52_v7 }
  0x36   :  { %195 = vmatpush3.xpose.msra.mxu0 %v52_v7 }
  0x37   :  { %196 = vmatprep.subr.mxu0 %v51_v8 }
  0x3a   :  { %197 = vmatpush3.xpose.msra.mxu0 %v51_v8 }
  0x3b   :  { %198 = vmatprep.subr.mxu0 %v50_v9 }
  0x3e   :  { %199 = vmatpush3.xpose.msra.mxu0 %v50_v9 }
  0x3f   :  { %200 = vmatprep.subr.mxu0 %v49_v10 }
  0x42   :  { %201 = vmatpush3.xpose.msra.mxu0 %v49_v10 }
  0x43   :  { %202 = vmatprep.subr.mxu0 %v48_v11 }
  0x46   :  { %203 = vmatpush3.xpose.msra.mxu0 %v48_v11 }
  0x47   :  { %204 = vmatprep.subr.mxu0 %v47_v12 }
  0x4a   :  { %205 = vmatpush3.xpose.msra.mxu0 %v47_v12 }
  0x4b   :  { %206 = vmatprep.subr.mxu0 %v46_v13 }
  0x4e   :  { %207 = vmatpush3.xpose.msra.mxu0 %v46_v13 }
  0x4f   :  { %208 = vmatprep.subr.mxu0 %v45_v14 }
  0x52   :  { %209 = vmatpush3.xpose.msra.mxu0 %v45_v14 }
  0x53   :  { %210 = vmatprep.subr.mxu0 %v44_v15 }
  0x56   :  { %211 = vmatpush3.xpose.msra.mxu0 %v44_v15 }
  0x57   :  { %212 = vmatprep.subr.mxu0 %v43_v16 }
  0x5a   :  { %213 = vmatpush3.xpose.msra.mxu0 %v43_v16 }
  0x5d   :  { %215 = vmatmul.mubr.f32.vlgmr.msra.gmra.mxu0 %v60_v17 }
 0x11d   :  { %v216_v19 = vpop.f32.mrf.mxu0 }
 0x11e   :  { %v140_v20 = vadd.f32 %v216_v19, %v163_v18 }
 0x11f   :  { %v134_v21 = vpop.f32.mrf.mxu0 }
 0x120   :  { %144 = vst [vmem:[#allocation7 + $0x8] sm:$0xff] %v140_v20  ;;  %v135_v22 = vadd.f32 %v163_v18, %v134_v21 }
 0x122   :  { %143 = vst [vmem:[#allocation7] sm:$0xff] %v135_v22 }
 0x123   :  { %273 = shalt.err (!%p270_p0)
}
 0x124   :  { %156 = dma.vmem_to_hbm [thread:$0]  %s151_s25, 256, %s337_s3, [#allocation4], %s289_s15, %s289_s15, %s290_s16  }
 0x125   :  { %286 = dma.done.wait [#allocation4], 256  }
 0x126   :  { %287 = vsyncadd [#allocation4], 4294967040 }
 0x127   :  { %160 = vsyncpa [#allocation3], 1 }
 0x128   :  { %161 = vsyncpa [#allocation6], 1 }
 0x129   :  { %162 = vsyncpa [#allocation4], 1 }

</bundles_post_ra>
